<compile_context>
chip_gen: v7x
topology: tpu7x:2x2x1
jax: 0.10.0
libtpu: 0.0.40
codegen_flags: <defaults>
</compile_context>

<pallas_src>
import functools

import jax
import jax.numpy as jnp
from jax.experimental import pallas as pl
from jax.experimental.pallas import tpu as pltpu

# Module hidden widths (fixed by the PyTorch spec).
H0, H1, H2 = 200, 300, 400


def _round_up(n, m):
    return ((n + m - 1) // m) * m


def _leaky_relu(v, slope=0.2):
    return jnp.where(v > 0, v, slope * v)


def generator2_kernel(x_ref,
                      w0_ref, b0_ref,
                      w1_ref, b1_ref,
                      w2_ref, b2_ref,
                      w3_ref, b3_ref,
                      o_ref):
    """One batch tile of the fused 4-layer MLP.

    x_ref:   [TM, F]        bf16
    wN_ref:  [*, *] (padded) bf16
    bN_ref:  [1, *] (padded) f32
    o_ref:   [TM, OUT_P]     f32
    """
    h = x_ref[...]                                                   # bf16 [TM, F]

    # Each layer: bf16 matmul with f32 accumulation, bias + activation in f32,
    # re-cast to bf16 only for the next MXU pass.
    h = _leaky_relu(jnp.dot(h, w0_ref[...],
                            preferred_element_type=jnp.float32) + b0_ref[...])
    h = _leaky_relu(jnp.dot(h.astype(jnp.bfloat16), w1_ref[...],
                            preferred_element_type=jnp.float32) + b1_ref[...])
    h = _leaky_relu(jnp.dot(h.astype(jnp.bfloat16), w2_ref[...],
                            preferred_element_type=jnp.float32) + b2_ref[...])
    y = jnp.dot(h.astype(jnp.bfloat16), w3_ref[...],
                preferred_element_type=jnp.float32) + b3_ref[...]
    o_ref[...] = jnp.tanh(y)


def _prepare_params(params):
    """Pad feature dims to multiples of 128 and cast weights to bf16.

    Zero padding is exact: padded output columns get pre-activation 0,
    LeakyReLU(0) = 0, and the matching padded weight rows of the next layer
    multiply those zeros, so the un-padded outputs are unchanged.
    """
    f_in = params["w0"].shape[0]
    n_out = params["w3"].shape[1]
    hp0, hp1, hp2 = _round_up(H0, 128), _round_up(H1, 128), _round_up(H2, 128)
    out_p = _round_up(n_out, 128)

    def pad_w(w, rows, cols):
        return jnp.pad(w, ((0, rows - w.shape[0]),
                           (0, cols - w.shape[1]))).astype(jnp.bfloat16)

    def pad_b(b, cols):
        return jnp.pad(b, ((0, 0), (0, cols - b.shape[1]))).astype(jnp.float32)

    padded = (pad_w(params["w0"], f_in, hp0), pad_b(params["b0"], hp0),
              pad_w(params["w1"], hp0, hp1),  pad_b(params["b1"], hp1),
              pad_w(params["w2"], hp1, hp2),  pad_b(params["b2"], hp2),
              pad_w(params["w3"], hp2, out_p), pad_b(params["b3"], out_p))
    return padded, out_p, n_out


@functools.partial(jax.jit, static_argnames=("tm",))
def generator2_forward(x, params, *, tm=256):
    """Generator2 forward pass. x: [B, dim] f32 -> [B, n_out] f32."""
    B, F = x.shape
    padded, out_p, n_out = _prepare_params(params)

    # Batch tile: multiple of 256 when the batch allows it (fills MXU rows on
    # v6e/v7x; also a multiple of 128 for v5e). Small batches use one tile.
    TM = min(tm, _round_up(B, 8))
    Bp = _round_up(B, TM)
    grid = (Bp // TM,)

    x_p = jnp.pad(x, ((0, Bp - B), (0, 0))).astype(jnp.bfloat16)

    # Weights/biases: whole-array block, constant index_map -> DMA'd once and
    # kept VMEM-resident across all batch tiles. (bf16 padded weights total
    # < 1 MiB, so the default double-buffer is negligible; pl.Buffered(1)
    # would only shave a few hundred KiB.)
    def const_spec(a):
        return pl.BlockSpec(a.shape, lambda i: (0, 0))

    in_specs = [pl.BlockSpec((TM, F), lambda i: (i, 0))]
    in_specs += [const_spec(a) for a in padded]
    out_specs = pl.BlockSpec((TM, out_p), lambda i: (i, 0))

    out = pl.pallas_call(
        generator2_kernel,
        grid=grid,
        in_specs=in_specs,
        out_specs=out_specs,
        out_shape=jax.ShapeDtypeStruct((Bp, out_p), jnp.float32),
        compiler_params=pltpu.CompilerParams(
            dimension_semantics=("parallel",),   # v7x: shard tiles over both TCs
            vmem_limit_bytes=16 << 20,           # ~2 MiB actually needed; leave headroom
        ),
    )(x_p, *padded)

    return out[:B, :n_out]


def init_params(key, dim, n_out):
    """Deterministic init mimicking nn.Linear's U(-1/sqrt(in), 1/sqrt(in))."""
    def linear(k, fan_in, fan_out):
        kw, kb = jax.random.split(k)
        bound = 1.0 / jnp.sqrt(jnp.float32(fan_in))
        w = jax.random.uniform(kw, (fan_in, fan_out), jnp.float32, -bound, bound)
        b = jax.random.uniform(kb, (1, fan_out), jnp.float32, -bound, bound)
        return w, b

    k0, k1, k2, k3 = jax.random.split(key, 4)
    w0, b0 = linear(k0, dim, H0)
    w1, b1 = linear(k1, H0, H1)
    w2, b2 = linear(k2, H1, H2)
    w3, b3 = linear(k3, H2, n_out)
    return {"w0": w0, "b0": b0, "w1": w1, "b1": b1,
            "w2": w2, "b2": b2, "w3": w3, "b3": b3}


def ref_forward(x, p):
    """Plain-JAX f32 reference of Generator2.forward."""
    h = _leaky_relu(x @ p["w0"] + p["b0"])
    h = _leaky_relu(h @ p["w1"] + p["b1"])
    h = _leaky_relu(h @ p["w2"] + p["b2"])
    return jnp.tanh(h @ p["w3"] + p["b3"])


if __name__ == "__main__":
    key = jax.random.PRNGKey(0)
    k_params, k_x = jax.random.split(key)

    DIM = 64           # n_features (latent dim)
    N_OUT = 50         # input_shape = (seq, 50) -> n_out = 50
    B = 4              # small batch for the smoke test

    params = init_params(k_params, DIM, N_OUT)
    x = jax.random.normal(k_x, (B, DIM), jnp.float32)

    out = generator2_forward(x, params)
    out = jax.block_until_ready(out)

    expected = ref_forward(x, params)
    assert out.shape == (B, N_OUT), out.shape
    # bf16 matmul inputs vs f32 reference: tolerance covers bf16 rounding only.
    max_err = float(jnp.max(jnp.abs(out - expected)))
    assert jnp.allclose(out, expected, atol=3e-2, rtol=0.0), max_err

    print("KERNEL_OK")
</pallas_src>

<mosaic_0001>
module attributes {stable_mosaic.version = 11 : i64} {
  func.func @generator2_kernel(%arg0: i32, %arg1: memref<8x64xbf16, #tpu.memory_space<vmem>>, %arg2: memref<64x256xbf16, #tpu.memory_space<vmem>>, %arg3: memref<1x256xf32, #tpu.memory_space<vmem>>, %arg4: memref<256x384xbf16, #tpu.memory_space<vmem>>, %arg5: memref<1x384xf32, #tpu.memory_space<vmem>>, %arg6: memref<384x512xbf16, #tpu.memory_space<vmem>>, %arg7: memref<1x512xf32, #tpu.memory_space<vmem>>, %arg8: memref<512x128xbf16, #tpu.memory_space<vmem>>, %arg9: memref<1x128xf32, #tpu.memory_space<vmem>>, %arg10: memref<8x128xf32, #tpu.memory_space<vmem>>) attributes {dimension_semantics = [#tpu.dimension_semantics<parallel>], iteration_bounds = array<i64: 1>, scalar_prefetch = 0 : i64, scratch_operands = 0 : i64, tpu.core_type = #tpu.core_type<tc>, window_params = [{transform_indices = @transform_0, window_bounds = array<i64: 8, 64>}, {pipeline_mode = #tpu.pipeline_mode<synchronous>, transform_indices = @transform_1, window_bounds = array<i64: 64, 256>}, {pipeline_mode = #tpu.pipeline_mode<synchronous>, transform_indices = @transform_2, window_bounds = array<i64: 1, 256>}, {pipeline_mode = #tpu.pipeline_mode<synchronous>, transform_indices = @transform_3, window_bounds = array<i64: 256, 384>}, {pipeline_mode = #tpu.pipeline_mode<synchronous>, transform_indices = @transform_4, window_bounds = array<i64: 1, 384>}, {pipeline_mode = #tpu.pipeline_mode<synchronous>, transform_indices = @transform_5, window_bounds = array<i64: 384, 512>}, {pipeline_mode = #tpu.pipeline_mode<synchronous>, transform_indices = @transform_6, window_bounds = array<i64: 1, 512>}, {pipeline_mode = #tpu.pipeline_mode<synchronous>, transform_indices = @transform_7, window_bounds = array<i64: 512, 128>}, {pipeline_mode = #tpu.pipeline_mode<synchronous>, transform_indices = @transform_8, window_bounds = array<i64: 1, 128>}, {transform_indices = @transform_9, window_bounds = array<i64: 8, 128>}]} {
    %c0 = arith.constant 0 : index
    %c0_0 = arith.constant 0 : index
    %0 = vector.load %arg1[%c0, %c0_0] : memref<8x64xbf16, #tpu.memory_space<vmem>>, vector<8x64xbf16>
    %c0_1 = arith.constant 0 : index
    %c0_2 = arith.constant 0 : index
    %1 = vector.load %arg2[%c0_1, %c0_2] : memref<64x256xbf16, #tpu.memory_space<vmem>>, vector<64x256xbf16>
    %cst = arith.constant dense<0.000000e+00> : vector<8x256xf32>
    %2 = tpu.matmul %0, %1, %cst {dimension_numbers = #tpu.dot_dimension_numbers<[1], [0], [0], [1], [0, 0, 1, 1], [], []>} : vector<8x64xbf16>, vector<64x256xbf16>, vector<8x256xf32> -> vector<8x256xf32>
    %c0_3 = arith.constant 0 : index
    %c0_4 = arith.constant 0 : index
    %3 = vector.load %arg3[%c0_3, %c0_4] : memref<1x256xf32, #tpu.memory_space<vmem>>, vector<1x256xf32>
    %4 = vector.broadcast %3 : vector<1x256xf32> to vector<8x256xf32>
    %5 = arith.addf %2, %4 : vector<8x256xf32>
    %cst_5 = arith.constant 0.000000e+00 : f32
    %6 = vector.broadcast %cst_5 : f32 to vector<8x256xf32>
    %7 = arith.cmpf ogt, %5, %6 : vector<8x256xf32>
    %cst_6 = arith.constant 2.000000e-01 : f32
    %8 = vector.broadcast %cst_6 : f32 to vector<8x256xf32>
    %9 = arith.mulf %8, %5 : vector<8x256xf32>
    %10 = arith.select %7, %5, %9 : vector<8x256xi1>, vector<8x256xf32>
    %11 = arith.truncf %10 : vector<8x256xf32> to vector<8x256xbf16>
    %c0_7 = arith.constant 0 : index
    %c0_8 = arith.constant 0 : index
    %12 = vector.load %arg4[%c0_7, %c0_8] : memref<256x384xbf16, #tpu.memory_space<vmem>>, vector<256x384xbf16>
    %cst_9 = arith.constant dense<0.000000e+00> : vector<8x384xf32>
    %13 = tpu.matmul %11, %12, %cst_9 {dimension_numbers = #tpu.dot_dimension_numbers<[1], [0], [0], [1], [0, 0, 1, 1], [], []>} : vector<8x256xbf16>, vector<256x384xbf16>, vector<8x384xf32> -> vector<8x384xf32>
    %c0_10 = arith.constant 0 : index
    %c0_11 = arith.constant 0 : index
    %14 = vector.load %arg5[%c0_10, %c0_11] : memref<1x384xf32, #tpu.memory_space<vmem>>, vector<1x384xf32>
    %15 = vector.broadcast %14 : vector<1x384xf32> to vector<8x384xf32>
    %16 = arith.addf %13, %15 : vector<8x384xf32>
    %cst_12 = arith.constant 0.000000e+00 : f32
    %17 = vector.broadcast %cst_12 : f32 to vector<8x384xf32>
    %18 = arith.cmpf ogt, %16, %17 : vector<8x384xf32>
    %cst_13 = arith.constant 2.000000e-01 : f32
    %19 = vector.broadcast %cst_13 : f32 to vector<8x384xf32>
    %20 = arith.mulf %19, %16 : vector<8x384xf32>
    %21 = arith.select %18, %16, %20 : vector<8x384xi1>, vector<8x384xf32>
    %22 = arith.truncf %21 : vector<8x384xf32> to vector<8x384xbf16>
    %c0_14 = arith.constant 0 : index
    %c0_15 = arith.constant 0 : index
    %23 = vector.load %arg6[%c0_14, %c0_15] : memref<384x512xbf16, #tpu.memory_space<vmem>>, vector<384x512xbf16>
    %cst_16 = arith.constant dense<0.000000e+00> : vector<8x512xf32>
    %24 = tpu.matmul %22, %23, %cst_16 {dimension_numbers = #tpu.dot_dimension_numbers<[1], [0], [0], [1], [0, 0, 1, 1], [], []>} : vector<8x384xbf16>, vector<384x512xbf16>, vector<8x512xf32> -> vector<8x512xf32>
    %c0_17 = arith.constant 0 : index
    %c0_18 = arith.constant 0 : index
    %25 = vector.load %arg7[%c0_17, %c0_18] : memref<1x512xf32, #tpu.memory_space<vmem>>, vector<1x512xf32>
    %26 = vector.broadcast %25 : vector<1x512xf32> to vector<8x512xf32>
    %27 = arith.addf %24, %26 : vector<8x512xf32>
    %cst_19 = arith.constant 0.000000e+00 : f32
    %28 = vector.broadcast %cst_19 : f32 to vector<8x512xf32>
    %29 = arith.cmpf ogt, %27, %28 : vector<8x512xf32>
    %cst_20 = arith.constant 2.000000e-01 : f32
    %30 = vector.broadcast %cst_20 : f32 to vector<8x512xf32>
    %31 = arith.mulf %30, %27 : vector<8x512xf32>
    %32 = arith.select %29, %27, %31 : vector<8x512xi1>, vector<8x512xf32>
    %33 = arith.truncf %32 : vector<8x512xf32> to vector<8x512xbf16>
    %c0_21 = arith.constant 0 : index
    %c0_22 = arith.constant 0 : index
    %34 = vector.load %arg8[%c0_21, %c0_22] : memref<512x128xbf16, #tpu.memory_space<vmem>>, vector<512x128xbf16>
    %cst_23 = arith.constant dense<0.000000e+00> : vector<8x128xf32>
    %35 = tpu.matmul %33, %34, %cst_23 {dimension_numbers = #tpu.dot_dimension_numbers<[1], [0], [0], [1], [0, 0, 1, 1], [], []>} : vector<8x512xbf16>, vector<512x128xbf16>, vector<8x128xf32> -> vector<8x128xf32>
    %c0_24 = arith.constant 0 : index
    %c0_25 = arith.constant 0 : index
    %36 = vector.load %arg9[%c0_24, %c0_25] : memref<1x128xf32, #tpu.memory_space<vmem>>, vector<1x128xf32>
    %37 = vector.broadcast %36 : vector<1x128xf32> to vector<8x128xf32>
    %38 = arith.addf %35, %37 : vector<8x128xf32>
    %39 = math.tanh %38 : vector<8x128xf32>
    %c0_26 = arith.constant 0 : index
    %c0_27 = arith.constant 0 : index
    %40 = vector.load %arg10[%c0_26, %c0_27] : memref<8x128xf32, #tpu.memory_space<vmem>>, vector<8x128xf32>
    tpu.vector_store %arg10[%c0_26, %c0_27], %39 {strides = array<i32>} : memref<8x128xf32, #tpu.memory_space<vmem>>, vector<8x128xf32>,
    return
  }
  func.func @transform_0(%arg0: i32) -> (i32, i32) {
    %c0_i32 = arith.constant 0 : i32
    %c0_i32_0 = arith.constant 0 : i32
    return %arg0, %c0_i32 : i32, i32
  }
  func.func @transform_1(%arg0: i32) -> (i32, i32) {
    %c0_i32 = arith.constant 0 : i32
    %c0_i32_0 = arith.constant 0 : i32
    %c0_i32_1 = arith.constant 0 : i32
    return %c0_i32, %c0_i32_0 : i32, i32
  }
  func.func @transform_2(%arg0: i32) -> (i32, i32) {
    %c0_i32 = arith.constant 0 : i32
    %c0_i32_0 = arith.constant 0 : i32
    %c0_i32_1 = arith.constant 0 : i32
    return %c0_i32, %c0_i32_0 : i32, i32
  }
  func.func @transform_3(%arg0: i32) -> (i32, i32) {
    %c0_i32 = arith.constant 0 : i32
    %c0_i32_0 = arith.constant 0 : i32
    %c0_i32_1 = arith.constant 0 : i32
    return %c0_i32, %c0_i32_0 : i32, i32
  }
  func.func @transform_4(%arg0: i32) -> (i32, i32) {
    %c0_i32 = arith.constant 0 : i32
    %c0_i32_0 = arith.constant 0 : i32
    %c0_i32_1 = arith.constant 0 : i32
    return %c0_i32, %c0_i32_0 : i32, i32
  }
  func.func @transform_5(%arg0: i32) -> (i32, i32) {
    %c0_i32 = arith.constant 0 : i32
    %c0_i32_0 = arith.constant 0 : i32
    %c0_i32_1 = arith.constant 0 : i32
    return %c0_i32, %c0_i32_0 : i32, i32
  }
  func.func @transform_6(%arg0: i32) -> (i32, i32) {
    %c0_i32 = arith.constant 0 : i32
    %c0_i32_0 = arith.constant 0 : i32
    %c0_i32_1 = arith.constant 0 : i32
    return %c0_i32, %c0_i32_0 : i32, i32
  }
  func.func @transform_7(%arg0: i32) -> (i32, i32) {
    %c0_i32 = arith.constant 0 : i32
    %c0_i32_0 = arith.constant 0 : i32
    %c0_i32_1 = arith.constant 0 : i32
    return %c0_i32, %c0_i32_0 : i32, i32
  }
  func.func @transform_8(%arg0: i32) -> (i32, i32) {
    %c0_i32 = arith.constant 0 : i32
    %c0_i32_0 = arith.constant 0 : i32
    %c0_i32_1 = arith.constant 0 : i32
    return %c0_i32, %c0_i32_0 : i32, i32
  }
  func.func @transform_9(%arg0: i32) -> (i32, i32) {
    %c0_i32 = arith.constant 0 : i32
    %c0_i32_0 = arith.constant 0 : i32
    return %arg0, %c0_i32 : i32, i32
  }
}

</mosaic_0001>

<bundles_post_ra>
// kernel: generator2_forward.1
= control target key start
LH: loop header
LB: loop body
LE: loop exit
PB: predicated region body
PF: predicated region fallthrough
CT: control target
= control target key end

     0   :  { %v2223_v1 = vmov 0   ;;  %vm94_vm0 = vcmask 523264   ;;  %v44_v60 = vlaneseq  ;;  %s2875_s1 = inlined_call_operand.vmem [shape: bf16[64,256], index: 1, kind: input, shape index: {}]   ;;  %s2876_s3 = inlined_call_operand.vmem [shape: bf16[256,384], index: 3, kind: input, shape index: {}]   ;;  %s2877_s0 = inlined_call_operand.vmem [shape: bf16[8,64], index: 0, kind: input, shape index: {}]   ;;  %s2878_s5 = inlined_call_operand.vmem [shape: bf16[384,512], index: 5, kind: input, shape index: {}]   ;;  %s2879_s2 = inlined_call_operand.vmem [shape: f32[1,256], index: 2, kind: input, shape index: {}]   ;;  %s2880_s7 = inlined_call_operand.vmem [shape: bf16[512,128], index: 7, kind: input, shape index: {}]   ;;  %s2881_s4 = inlined_call_operand.vmem [shape: f32[1,384], index: 4, kind: input, shape index: {}]   ;;  %s2882_s6 = inlined_call_operand.vmem [shape: f32[1,512], index: 6, kind: input, shape index: {}]   ;;  %s2883_s8 = inlined_call_operand.vmem [shape: f32[1,128], index: 8, kind: input, shape index: {}]   ;;  %s2884_s9 = inlined_call_operand.vmem [shape: f32[8,128], index: 9, kind: output, shape index: {}]  }
   0x1   :  { %v1969_v0 = vld [vmem:[%s2875_s1 + $0x4] ss:$8 sps:$4 sm:$0xff]   ;;  %130 = vmatprep.mubr.bf16.mxu0 %v2223_v1  ;;  %v1971_v2 = vld [vmem:[%s2875_s1] ss:$8 sps:$4 sm:$0xff]   ;;  %v1972_v3 = vld [vmem:[%s2875_s1 + $0x14] ss:$8 sps:$4 sm:$0xff]  }
   0x2   :  { %98 = vmatprep.subr.bf16.mxu0 %v1969_v0  ;;  %v1974_v4 = vld [vmem:[%s2875_s1 + $0x10] ss:$8 sps:$4 sm:$0xff]   ;;  %v1975_v5 = vld [vmem:[%s2875_s1 + $0x24] ss:$8 sps:$4 sm:$0xff]   ;;  %v1977_v6 = vld [vmem:[%s2875_s1 + $0x20] ss:$8 sps:$4 sm:$0xff]  }
   0x3   :  { %99 = vmatpush1.bf16.msra.mxu0 %v1971_v2  ;;  %v1981_v7 = vld [vmem:[%s2876_s3 + $0x4] ss:$12 sps:$4 sm:$0xff]   ;;  %v1983_v8 = vld [vmem:[%s2876_s3] ss:$12 sps:$4 sm:$0xff]   ;;  %v1984_v9 = vld [vmem:[%s2876_s3 + $0x1c] ss:$12 sps:$4 sm:$0xff]  }
   0x4   :  { %100 = vmatprep.subr.bf16.mxu0 %v1972_v3  ;;  %v1978_v10 = vld [vmem:[%s2875_s1 + $0x34] ss:$8 sps:$4 sm:$0xff]   ;;  %484 = vmatprep.subr.bf16.mxu1 %v1981_v7  ;;  %v1986_v11 = vld [vmem:[%s2876_s3 + $0x18] ss:$12 sps:$4 sm:$0xff]   ;;  %v33_v16 = vld [vmem:[%s2877_s0] sm:$0xf] }
   0x5   :  { %485 = vmatpush1.bf16.msra.mxu1 %v1983_v8  ;;  %v1987_v12 = vld [vmem:[%s2876_s3 + $0x34] ss:$12 sps:$4 sm:$0xff]   ;;  %v1980_v13 = vld [vmem:[%s2875_s1 + $0x30] ss:$8 sps:$4 sm:$0xff]   ;;  %v1996_v22 = vld [vmem:[%s2876_s3 + $0x7c] ss:$12 sps:$4 sm:$0xff]  }
   0x6   :  { %486 = vmatprep.subr.bf16.mxu1 %v1984_v9  ;;  %v1989_v14 = vld [vmem:[%s2876_s3 + $0x30] ss:$12 sps:$4 sm:$0xff]   ;;  %v1990_v15 = vld [vmem:[%s2876_s3 + $0x4c] ss:$12 sps:$4 sm:$0xff]   ;;  %v1992_v17 = vld [vmem:[%s2876_s3 + $0x48] ss:$12 sps:$4 sm:$0xff]  }
   0x7   :  { %101 = vmatpush1.bf16.msra.mxu0 %v1974_v4  ;;  %v1993_v18 = vld [vmem:[%s2876_s3 + $0x64] ss:$12 sps:$4 sm:$0xff]   ;;  %v2007_v19 = vld [vmem:[%s2876_s3 + $0xc8] ss:$12 sps:$4 sm:$0xff]   ;;  %v1995_v21 = vld [vmem:[%s2876_s3 + $0x60] ss:$12 sps:$4 sm:$0xff]  }
   0x8   :  { %102 = vmatprep.subr.bf16.mxu0 %v1975_v5  ;;  %v2009_v20 = vld [vmem:[%s2876_s3 + $0x8] ss:$12 sps:$4 sm:$0xff]   ;;  %v2012_v23 = vld [vmem:[%s2876_s3 + $0xe0] ss:$12 sps:$4 sm:$0xff]   ;;  %v1998_v25 = vld [vmem:[%s2876_s3 + $0x78] ss:$12 sps:$4 sm:$0xff]  }
   0x9   :  { %487 = vmatpush1.bf16.msra.mxu1 %v1986_v11  ;;  %v2014_v24 = vld [vmem:[%s2876_s3 + $0x20] ss:$12 sps:$4 sm:$0xff]   ;;  %v2017_v26 = vld [vmem:[%s2876_s3 + $0xf8] ss:$12 sps:$4 sm:$0xff]   ;;  %v2001_v29 = vld [vmem:[%s2876_s3 + $0x90] ss:$12 sps:$4 sm:$0xff]  }
   0xa   :  { %488 = vmatprep.subr.bf16.mxu1 %v1987_v12  ;;  %v1999_v27 = vld [vmem:[%s2876_s3 + $0x94] ss:$12 sps:$4 sm:$0xff]   ;;  %v2019_v28 = vld [vmem:[%s2876_s3 + $0x38] ss:$12 sps:$4 sm:$0xff]   ;;  %v2022_v30 = vld [vmem:[%s2876_s3 + $0x110] ss:$12 sps:$4 sm:$0xff]  }
   0xb   :  { %103 = vmatpush1.bf16.msra.mxu0 %v1977_v6  ;;  %v2024_v31 = vld [vmem:[%s2876_s3 + $0x50] ss:$12 sps:$4 sm:$0xff]   ;;  %v2002_v32 = vld [vmem:[%s2876_s3 + $0xac] ss:$12 sps:$4 sm:$0xff]   ;;  %v2004_v33 = vld [vmem:[%s2876_s3 + $0xa8] ss:$12 sps:$4 sm:$0xff]  }
   0xc   :  { %104 = vmatprep.subr.bf16.mxu0 %v1978_v10  ;;  %v2027_v34 = vld [vmem:[%s2876_s3 + $0x128] ss:$12 sps:$4 sm:$0xff]   ;;  %v2005_v35 = vld [vmem:[%s2876_s3 + $0xc4] ss:$12 sps:$4 sm:$0xff]   ;;  %v2032_v37 = vld [vmem:[%s2876_s3 + $0x140] ss:$12 sps:$4 sm:$0xff]  }
   0xd   :  { %489 = vmatpush1.bf16.msra.mxu1 %v1989_v14  ;;  %v2029_v36 = vld [vmem:[%s2876_s3 + $0x68] ss:$12 sps:$4 sm:$0xff]   ;;  %v2008_v38 = vld [vmem:[%s2876_s3 + $0xc0] ss:$12 sps:$4 sm:$0xff]   ;;  %v2013_v41 = vld [vmem:[%s2876_s3 + $0xd8] ss:$12 sps:$4 sm:$0xff]  }
   0xe   :  { %490 = vmatprep.subr.bf16.mxu1 %v1990_v15  ;;  %v2010_v39 = vld [vmem:[%s2876_s3 + $0xdc] ss:$12 sps:$4 sm:$0xff]   ;;  %v2034_v40 = vld [vmem:[%s2876_s3 + $0x80] ss:$12 sps:$4 sm:$0xff]   ;;  %v2025_v46 = vld [vmem:[%s2876_s3 + $0x124] ss:$12 sps:$4 sm:$0xff]  }
   0xf   :  { %105 = vmatpush1.bf16.msra.mxu0 %v1980_v13  ;;  %v2015_v42 = vld [vmem:[%s2876_s3 + $0xf4] ss:$12 sps:$4 sm:$0xff]   ;;  %v2018_v43 = vld [vmem:[%s2876_s3 + $0xf0] ss:$12 sps:$4 sm:$0xff]   ;;  %v2020_v44 = vld [vmem:[%s2876_s3 + $0x10c] ss:$12 sps:$4 sm:$0xff]  }
  0x10   :  { %1890 = vmatprep.subr.bf16.mxu0 %v2007_v19  ;;  %v2023_v45 = vld [vmem:[%s2876_s3 + $0x108] ss:$12 sps:$4 sm:$0xff]   ;;  %v2028_v47 = vld [vmem:[%s2876_s3 + $0x120] ss:$12 sps:$4 sm:$0xff]   ;;  %v2033_v49 = vld [vmem:[%s2876_s3 + $0x138] ss:$12 sps:$4 sm:$0xff]  }
  0x11   :  { %491 = vmatpush1.bf16.msra.mxu1 %v1992_v17  ;;  %v2030_v48 = vld [vmem:[%s2876_s3 + $0x13c] ss:$12 sps:$4 sm:$0xff]   ;;  %v2035_v50 = vld [vmem:[%s2876_s3 + $0x154] ss:$12 sps:$4 sm:$0xff]   ;;  %v2037_v51 = vld [vmem:[%s2876_s3 + $0x158] ss:$12 sps:$4 sm:$0xff]  }
  0x12   :  { %1712 = vmatmul.mubr.msk.bf16.vlgmr.msra.gmra.mrb[0].mxu0 %vm94_vm0, %v33_v16  ;;  %492 = vmatprep.subr.bf16.mxu1 %v1993_v18  ;;  %v2038_v52 = vld [vmem:[%s2876_s3 + $0x150] ss:$12 sps:$4 sm:$0xff]   ;;  %v2039_v53 = vld [vmem:[%s2876_s3 + $0x98] ss:$12 sps:$4 sm:$0xff]   ;;  %v2043_v56 = vld [vmem:[%s2876_s3 + $0x168] ss:$12 sps:$4 sm:$0xff]  }
  0x13   :  { %1891 = vmatpush3.bf16.msra.mxu0 %v2009_v20  ;;  %v2040_v54 = vld [vmem:[%s2876_s3 + $0x16c] ss:$12 sps:$4 sm:$0xff]   ;;  %v2042_v55 = vld [vmem:[%s2876_s3 + $0x170] ss:$12 sps:$4 sm:$0xff]   ;;  %v2047_v58 = vld [vmem:[%s2878_s5 + $0x4] ss:$16 sps:$4 sm:$0xff]  }
  0x14   :  { %1892 = vmatprep.subr.bf16.mxu0 %v2012_v23  ;;  %v2044_v57 = vld [vmem:[%s2876_s3 + $0xb0] ss:$12 sps:$4 sm:$0xff]   ;;  %v2452_v61 = vshrl.u32 %v44_v60, 7  ;;  %v42_v63 = vld [vmem:[%s2879_s2] sm:$0x3] }
  0x15   :  { %493 = vmatpush1.bf16.msra.mxu1 %v1995_v21  ;;  %v2050_v59 = vld [vmem:[%s2878_s5 + $0xc] ss:$16 sps:$4 sm:$0xff]   ;;  %v2045_v15 = vld [vmem:[%s2878_s5] ss:$16 sps:$4 sm:$0xff]   ;;  %v2048_v16 = vld [vmem:[%s2878_s5 + $0x8] ss:$16 sps:$4 sm:$0xff]  }
  0x16   :  { %494 = vmatprep.subr.bf16.mxu1 %v1996_v22  ;;  %v2455_v62 = vsub.s32 0, %v2452_v61  ;;  %v2461_v0 = vsub.s32 1, %v2452_v61  ;;  %v2053_v18 = vld [vmem:[%s2878_s5 + $0x24] ss:$16 sps:$4 sm:$0xff]   ;;  %v2056_v19 = vld [vmem:[%s2878_s5 + $0x2c] ss:$16 sps:$4 sm:$0xff]  }
  0x17   :  { %1893 = vmatpush3.bf16.msra.mxu0 %v2014_v24  ;;  %v2051_v20 = vld [vmem:[%s2878_s5 + $0x20] ss:$16 sps:$4 sm:$0xff]   ;;  %v2054_v21 = vld [vmem:[%s2878_s5 + $0x28] ss:$16 sps:$4 sm:$0xff]   ;;  %v2059_v22 = vld [vmem:[%s2878_s5 + $0x44] ss:$16 sps:$4 sm:$0xff]  }
  0x18   :  { %1894 = vmatprep.subr.bf16.mxu0 %v2017_v26  ;;  %v47_v2 = vrot.slane %v42_v63, %v2455_v62  ;;  %v51_v3 = vrot.slane %v42_v63, %v2461_v0  ;;  %v2062_v23 = vld [vmem:[%s2878_s5 + $0x4c] ss:$16 sps:$4 sm:$0xff]   ;;  %v2057_v24 = vld [vmem:[%s2878_s5 + $0x40] ss:$16 sps:$4 sm:$0xff]   ;;  %v2065_v26 = vld [vmem:[%s2878_s5 + $0x64] ss:$16 sps:$4 sm:$0xff]  }
  0x19   :  { %495 = vmatpush1.bf16.msra.mxu1 %v1998_v25  ;;  %v2060_v25 = vld [vmem:[%s2878_s5 + $0x48] ss:$16 sps:$4 sm:$0xff]   ;;  %v2111_v60 = vld [vmem:[%s2878_s5 + $0x160] ss:$16 sps:$4 sm:$0xff]  }
  0x1a   :  { %496 = vmatprep.subr.bf16.mxu1 %v1999_v27  ;;  %v2068_v27 = vld [vmem:[%s2878_s5 + $0x6c] ss:$16 sps:$4 sm:$0xff]   ;;  %v2114_v63 = vld [vmem:[%s2878_s5 + $0x168] ss:$16 sps:$4 sm:$0xff]  }
  0x1b   :  { %1895 = vmatpush3.bf16.msra.mxu0 %v2019_v28  ;;  %v2063_v28 = vld [vmem:[%s2878_s5 + $0x60] ss:$16 sps:$4 sm:$0xff]  }
  0x1c   :  { %1896 = vmatprep.subr.bf16.mxu0 %v2022_v30  ;;  %v2071_v30 = vld [vmem:[%s2878_s5 + $0x84] ss:$16 sps:$4 sm:$0xff]  }
  0x1d   :  { %497 = vmatpush1.bf16.msra.mxu1 %v2001_v29  ;;  %v2066_v29 = vld [vmem:[%s2878_s5 + $0x68] ss:$16 sps:$4 sm:$0xff]  }
  0x1e   :  { %498 = vmatprep.subr.bf16.mxu1 %v2002_v32  ;;  %v2069_v32 = vld [vmem:[%s2878_s5 + $0x80] ss:$16 sps:$4 sm:$0xff]  }
  0x1f   :  { %1897 = vmatpush3.bf16.msra.mxu0 %v2024_v31  ;;  %v2074_v31 = vld [vmem:[%s2878_s5 + $0x8c] ss:$16 sps:$4 sm:$0xff]  }
  0x20   :  { %1898 = vmatprep.subr.bf16.mxu0 %v2027_v34  ;;  %v2077_v34 = vld [vmem:[%s2878_s5 + $0xa4] ss:$16 sps:$4 sm:$0xff]  }
  0x21   :  { %499 = vmatpush1.bf16.msra.mxu1 %v2004_v33  ;;  %v2072_v33 = vld [vmem:[%s2878_s5 + $0x88] ss:$16 sps:$4 sm:$0xff]  }
  0x22   :  { %500 = vmatprep.subr.bf16.mxu1 %v2005_v35  ;;  %v2080_v35 = vld [vmem:[%s2878_s5 + $0xac] ss:$16 sps:$4 sm:$0xff]  }
  0x23   :  { %1899 = vmatpush3.bf16.msra.mxu0 %v2029_v36  ;;  %v2075_v36 = vld [vmem:[%s2878_s5 + $0xa0] ss:$16 sps:$4 sm:$0xff]  }
  0x24   :  { %1900 = vmatprep.subr.bf16.mxu0 %v2032_v37  ;;  %v2078_v37 = vld [vmem:[%s2878_s5 + $0xa8] ss:$16 sps:$4 sm:$0xff]  }
  0x25   :  { %501 = vmatpush1.bf16.msra.mxu1 %v2008_v38  ;;  %v2083_v38 = vld [vmem:[%s2878_s5 + $0xc4] ss:$16 sps:$4 sm:$0xff]  }
  0x26   :  { %502 = vmatprep.subr.bf16.mxu1 %v2010_v39  ;;  %v2086_v39 = vld [vmem:[%s2878_s5 + $0xcc] ss:$16 sps:$4 sm:$0xff]  }
  0x27   :  { %1901 = vmatpush3.bf16.msra.mxu0 %v2034_v40  ;;  %v2081_v40 = vld [vmem:[%s2878_s5 + $0xc0] ss:$16 sps:$4 sm:$0xff]  }
  0x28   :  { %1902 = vmatprep.subr.bf16.mxu0 %v2037_v51  ;;  %v2104_v51 = vld [vmem:[%s2878_s5 + $0x12c] ss:$16 sps:$4 sm:$0xff]  }
  0x29   :  { %503 = vmatpush1.bf16.msra.mxu1 %v2013_v41  ;;  %v2084_v41 = vld [vmem:[%s2878_s5 + $0xc8] ss:$16 sps:$4 sm:$0xff]  }
  0x2a   :  { %504 = vmatprep.subr.bf16.mxu1 %v2015_v42  ;;  %v2089_v42 = vld [vmem:[%s2878_s5 + $0xe4] ss:$16 sps:$4 sm:$0xff]  }
  0x2b   :  { %1903 = vmatpush3.bf16.msra.mxu0 %v2039_v53  ;;  %v2102_v53 = vld [vmem:[%s2878_s5 + $0x128] ss:$16 sps:$4 sm:$0xff]  }
  0x2c   :  { %1904 = vmatprep.subr.bf16.mxu0 %v2042_v55  ;;  %v2110_v55 = vld [vmem:[%s2878_s5 + $0x14c] ss:$16 sps:$4 sm:$0xff]  }
  0x2d   :  { %505 = vmatpush1.bf16.msra.mxu1 %v2018_v43  ;;  %v2092_v43 = vld [vmem:[%s2878_s5 + $0xec] ss:$16 sps:$4 sm:$0xff]  }
  0x2e   :  { %506 = vmatprep.subr.bf16.mxu1 %v2020_v44  ;;  %v2087_v44 = vld [vmem:[%s2878_s5 + $0xe0] ss:$16 sps:$4 sm:$0xff]  }
  0x2f   :  { %1905 = vmatpush3.bf16.msra.mxu0 %v2044_v57  ;;  %v2108_v57 = vld [vmem:[%s2878_s5 + $0x148] ss:$16 sps:$4 sm:$0xff]  }
  0x30   :  { %1175 = vmatprep.subr.bf16.mxu0 %v2047_v58  ;;  %v2113_v58 = vld [vmem:[%s2878_s5 + $0x164] ss:$16 sps:$4 sm:$0xff]  }
  0x31   :  { %507 = vmatpush1.bf16.msra.mxu1 %v2023_v45  ;;  %v2090_v45 = vld [vmem:[%s2878_s5 + $0xe8] ss:$16 sps:$4 sm:$0xff]  }
  0x32   :  { %508 = vmatprep.subr.bf16.mxu1 %v2025_v46  ;;  %v2095_v46 = vld [vmem:[%s2878_s5 + $0x104] ss:$16 sps:$4 sm:$0xff]  }
  0x35   :  { %509 = vmatpush1.bf16.msra.mxu1 %v2028_v47  ;;  %v2098_v47 = vld [vmem:[%s2878_s5 + $0x10c] ss:$16 sps:$4 sm:$0xff]  }
  0x36   :  { %510 = vmatprep.subr.bf16.mxu1 %v2030_v48  ;;  %v2093_v48 = vld [vmem:[%s2878_s5 + $0x100] ss:$16 sps:$4 sm:$0xff]  }
  0x39   :  { %511 = vmatpush1.bf16.msra.mxu1 %v2033_v49  ;;  %v2096_v49 = vld [vmem:[%s2878_s5 + $0x108] ss:$16 sps:$4 sm:$0xff]  }
  0x3a   :  { %512 = vmatprep.subr.bf16.mxu1 %v2035_v50  ;;  %v2101_v50 = vld [vmem:[%s2878_s5 + $0x124] ss:$16 sps:$4 sm:$0xff]  }
  0x3d   :  { %513 = vmatpush1.bf16.msra.mxu1 %v2038_v52  ;;  %v2099_v52 = vld [vmem:[%s2878_s5 + $0x120] ss:$16 sps:$4 sm:$0xff]  }
  0x3e   :  { %514 = vmatprep.subr.bf16.mxu1 %v2040_v54  ;;  %v2107_v54 = vld [vmem:[%s2878_s5 + $0x144] ss:$16 sps:$4 sm:$0xff]  }
  0x41   :  { %515 = vmatpush1.bf16.msra.mxu1 %v2043_v56  ;;  %v2105_v56 = vld [vmem:[%s2878_s5 + $0x140] ss:$16 sps:$4 sm:$0xff]  }
  0x42   :  { %1257 = vmatprep.subr.bf16.mxu1 %v2050_v59  ;;  %v2116_v59 = vld [vmem:[%s2878_s5 + $0x16c] ss:$16 sps:$4 sm:$0xff]  }
  0xe5   :  { %v132_v4 = vpop.f32.mrb[0].mxu0 }
  0xe6   :  { %v133_v5 = vadd.f32 %v132_v4, %v47_v2  ;;  %v134_v6 = vpop.f32.mrb[1].mxu0  ;;  %v2119_v2 = vld [vmem:[%s2878_s5 + $0x184] ss:$16 sps:$4 sm:$0xff]   ;;  %v2117_v4 = vld [vmem:[%s2878_s5 + $0x180] ss:$16 sps:$4 sm:$0xff]  }
  0xe7   :  { %v135_v7 = vadd.f32 %v134_v6, %v51_v3  ;;  %v136_v8 = vpop.f32.mrb[2].mxu0  ;;  %v2122_v3 = vld [vmem:[%s2878_s5 + $0x18c] ss:$16 sps:$4 sm:$0xff]   ;;  %v2125_v6 = vld [vmem:[%s2878_s5 + $0x1a4] ss:$16 sps:$4 sm:$0xff]  }
  0xe8   :  { %vm139_vm1 = vcmp.gt.f32.partialorder %v133_v5, 0.0  ;;  %v141_v9 = vmul.f32 0.2, %v133_v5  ;;  %v137_v10 = vpop.f32.mrb[3].mxu0  ;;  %v2123_v8 = vld [vmem:[%s2878_s5 + $0x1a0] ss:$16 sps:$4 sm:$0xff]  }
  0xe9   :  { %v142_v11 = vmul.f32 0.2, %v135_v7  ;;  %vm140_vm2 = vcmp.gt.f32.partialorder %v135_v7, 0.0  ;;  %v2131_v10 = vld [vmem:[%s2878_s5 + $0x1c4] ss:$16 sps:$4 sm:$0xff]  }
  0xea   :  { %v143_v12 = vsel %vm139_vm1, %v133_v5, %v141_v9  ;;  %v2120_v5 = vld [vmem:[%s2878_s5 + $0x188] ss:$16 sps:$4 sm:$0xff]  }
  0xeb   :  { %v144_v13 = vsel %vm140_vm2, %v135_v7, %v142_v11  ;;  %v145_v17 = vpack.c.bf16 %v143_v12, %v143_v12  ;;  %v2128_v7 = vld [vmem:[%s2878_s5 + $0x1ac] ss:$16 sps:$4 sm:$0xff]   ;;  %v2126_v9 = vld [vmem:[%s2878_s5 + $0x1a8] ss:$16 sps:$4 sm:$0xff]   ;;  %v2129_v12 = vld [vmem:[%s2878_s5 + $0x1c0] ss:$16 sps:$4 sm:$0xff]  }
  0xec   :  { %v146_v14 = vpack.c.bf16 %v144_v13, %v144_v13  ;;  %v2134_v11 = vld [vmem:[%s2878_s5 + $0x1cc] ss:$16 sps:$4 sm:$0xff]   ;;  %v2132_v13 = vld [vmem:[%s2878_s5 + $0x1c8] ss:$16 sps:$4 sm:$0xff]  }
  0xee   :  { %516 = vmatprep.mubr.bf16.mxu1 %v146_v14  ;;  %557 = vmatprep.mubr.bf16.mxu0 %v146_v14  ;;  %v2137_v14 = vld [vmem:[%s2878_s5 + $0x1e4] ss:$16 sps:$4 sm:$0xff]  }
  0xef   :  { %517 = vmatmul.mubr.bf16.vlgmr.msra.gmra.mrb[0].mxu1 %v145_v17  ;;  %558 = vmatmul.mubr.bf16.vlgmr.msra.gmra.mrb[4].mxu0 %v145_v17  ;;  %v2138_v17 = vld [vmem:[%s2878_s5 + $0x1e8] ss:$16 sps:$4 sm:$0xff]  }
  0xf0   :  { %1176 = vmatpush1.bf16.msra.mxu0 %v2045_v15  ;;  %1258 = vmatpush1.bf16.msra.mxu1 %v2048_v16  ;;  %v2140_v15 = vld [vmem:[%s2878_s5 + $0x1ec] ss:$16 sps:$4 sm:$0xff]   ;;  %v2135_v16 = vld [vmem:[%s2878_s5 + $0x1e0] ss:$16 sps:$4 sm:$0xff]  }
  0xf1   :  { %1177 = vmatprep.subr.bf16.mxu0 %v2053_v18  ;;  %1259 = vmatprep.subr.bf16.mxu1 %v2056_v19  ;;  %v2143_v18 = vld [vmem:[%s2878_s5 + $0x204] ss:$16 sps:$4 sm:$0xff]   ;;  %v2146_v19 = vld [vmem:[%s2878_s5 + $0x20c] ss:$16 sps:$4 sm:$0xff]  }
  0xf4   :  { %1178 = vmatpush1.bf16.msra.mxu0 %v2051_v20  ;;  %1260 = vmatpush1.bf16.msra.mxu1 %v2054_v21  ;;  %v2660_v20 = vld [vmem:[%s2881_s4] sm:$0x7] }
  0xf5   :  { %1179 = vmatprep.subr.bf16.mxu0 %v2059_v22  ;;  %1261 = vmatprep.subr.bf16.mxu1 %v2062_v23  ;;  %v216_v21 = vrot.slane %v2660_v20, %v2455_v62  ;;  %v220_v22 = vrot.slane %v2660_v20, %v2461_v0 }
  0xf8   :  { %1180 = vmatpush1.bf16.msra.mxu0 %v2057_v24  ;;  %1262 = vmatpush1.bf16.msra.mxu1 %v2060_v25 }
  0xf9   :  { %1181 = vmatprep.subr.bf16.mxu0 %v2065_v26  ;;  %1263 = vmatprep.subr.bf16.mxu1 %v2068_v27 }
  0xfc   :  { %1182 = vmatpush1.bf16.msra.mxu0 %v2063_v28  ;;  %1264 = vmatpush1.bf16.msra.mxu1 %v2066_v29 }
  0xfd   :  { %1183 = vmatprep.subr.bf16.mxu0 %v2071_v30  ;;  %1265 = vmatprep.subr.bf16.mxu1 %v2074_v31 }
 0x100   :  { %1184 = vmatpush1.bf16.msra.mxu0 %v2069_v32  ;;  %1266 = vmatpush1.bf16.msra.mxu1 %v2072_v33 }
 0x101   :  { %1185 = vmatprep.subr.bf16.mxu0 %v2077_v34  ;;  %1267 = vmatprep.subr.bf16.mxu1 %v2080_v35 }
 0x104   :  { %1186 = vmatpush1.bf16.msra.mxu0 %v2075_v36  ;;  %1268 = vmatpush1.bf16.msra.mxu1 %v2078_v37 }
 0x105   :  { %1187 = vmatprep.subr.bf16.mxu0 %v2083_v38  ;;  %1269 = vmatprep.subr.bf16.mxu1 %v2086_v39  ;;  %v2141_v39 = vld [vmem:[%s2878_s5 + $0x200] ss:$16 sps:$4 sm:$0xff]  }
 0x108   :  { %1188 = vmatpush1.bf16.msra.mxu0 %v2081_v40  ;;  %1270 = vmatpush1.bf16.msra.mxu1 %v2084_v41  ;;  %v2144_v40 = vld [vmem:[%s2878_s5 + $0x208] ss:$16 sps:$4 sm:$0xff]  }
 0x109   :  { %1189 = vmatprep.subr.bf16.mxu0 %v2089_v42  ;;  %1271 = vmatprep.subr.bf16.mxu1 %v2092_v43  ;;  %v2149_v42 = vld [vmem:[%s2878_s5 + $0x224] ss:$16 sps:$4 sm:$0xff]   ;;  %v2152_v43 = vld [vmem:[%s2878_s5 + $0x22c] ss:$16 sps:$4 sm:$0xff]  }
 0x10c   :  { %1190 = vmatpush1.bf16.msra.mxu0 %v2087_v44  ;;  %1272 = vmatpush1.bf16.msra.mxu1 %v2090_v45  ;;  %v2147_v44 = vld [vmem:[%s2878_s5 + $0x220] ss:$16 sps:$4 sm:$0xff]   ;;  %v2150_v45 = vld [vmem:[%s2878_s5 + $0x228] ss:$16 sps:$4 sm:$0xff]  }
 0x10d   :  { %1191 = vmatprep.subr.bf16.mxu0 %v2095_v46  ;;  %1273 = vmatprep.subr.bf16.mxu1 %v2098_v47  ;;  %v2155_v46 = vld [vmem:[%s2878_s5 + $0x244] ss:$16 sps:$4 sm:$0xff]   ;;  %v2158_v47 = vld [vmem:[%s2878_s5 + $0x24c] ss:$16 sps:$4 sm:$0xff]  }
 0x110   :  { %1192 = vmatpush1.bf16.msra.mxu0 %v2093_v48  ;;  %1274 = vmatpush1.bf16.msra.mxu1 %v2096_v49  ;;  %v2153_v48 = vld [vmem:[%s2878_s5 + $0x240] ss:$16 sps:$4 sm:$0xff]   ;;  %v2156_v49 = vld [vmem:[%s2878_s5 + $0x248] ss:$16 sps:$4 sm:$0xff]  }
 0x111   :  { %1193 = vmatprep.subr.bf16.mxu0 %v2101_v50  ;;  %1275 = vmatprep.subr.bf16.mxu1 %v2104_v51  ;;  %v2161_v50 = vld [vmem:[%s2878_s5 + $0x264] ss:$16 sps:$4 sm:$0xff]   ;;  %v2159_v51 = vld [vmem:[%s2878_s5 + $0x260] ss:$16 sps:$4 sm:$0xff]  }
 0x114   :  { %1194 = vmatpush1.bf16.msra.mxu0 %v2099_v52  ;;  %1276 = vmatpush1.bf16.msra.mxu1 %v2102_v53  ;;  %v2162_v52 = vld [vmem:[%s2878_s5 + $0x268] ss:$16 sps:$4 sm:$0xff]   ;;  %v2167_v53 = vld [vmem:[%s2878_s5 + $0x284] ss:$16 sps:$4 sm:$0xff]  }
 0x115   :  { %1195 = vmatprep.subr.bf16.mxu0 %v2107_v54  ;;  %1277 = vmatprep.subr.bf16.mxu1 %v2110_v55  ;;  %v2170_v54 = vld [vmem:[%s2878_s5 + $0x28c] ss:$16 sps:$4 sm:$0xff]   ;;  %v223_v55 = vsub.s32 2, %v2452_v61 }
 0x118   :  { %1196 = vmatpush1.bf16.msra.mxu0 %v2105_v56  ;;  %1278 = vmatpush1.bf16.msra.mxu1 %v2108_v57  ;;  %v2165_v56 = vld [vmem:[%s2878_s5 + $0x280] ss:$16 sps:$4 sm:$0xff]   ;;  %v2168_v57 = vld [vmem:[%s2878_s5 + $0x288] ss:$16 sps:$4 sm:$0xff]  }
 0x119   :  { %1197 = vmatprep.subr.bf16.mxu0 %v2113_v58  ;;  %1279 = vmatprep.subr.bf16.mxu1 %v2116_v59  ;;  %v2173_v58 = vld [vmem:[%s2878_s5 + $0x2a4] ss:$16 sps:$4 sm:$0xff]   ;;  %v2176_v59 = vld [vmem:[%s2878_s5 + $0x2ac] ss:$16 sps:$4 sm:$0xff]  }
 0x11c   :  { %1198 = vmatpush1.bf16.msra.mxu0 %v2111_v60  ;;  %1280 = vmatpush1.bf16.msra.mxu1 %v2114_v63  ;;  %v224_v60 = vrot.slane %v2660_v20, %v223_v55  ;;  %v2171_v63 = vld [vmem:[%s2878_s5 + $0x2a0] ss:$16 sps:$4 sm:$0xff]   ;;  %v2194_v20 = vld [vmem:[%s2880_s7 + $0xc8] sm:$0xff]  }
 0x11d   :  { %1199 = vmatprep.subr.bf16.mxu0 %v2119_v2  ;;  %1281 = vmatprep.subr.bf16.mxu1 %v2122_v3  ;;  %v2174_v2 = vld [vmem:[%s2878_s5 + $0x2a8] ss:$16 sps:$4 sm:$0xff]   ;;  %v2179_v3 = vld [vmem:[%s2878_s5 + $0x2c4] ss:$16 sps:$4 sm:$0xff]  }
 0x120   :  { %1200 = vmatpush1.bf16.msra.mxu0 %v2117_v4  ;;  %1282 = vmatpush1.bf16.msra.mxu1 %v2120_v5  ;;  %v2182_v4 = vld [vmem:[%s2878_s5 + $0x2cc] ss:$16 sps:$4 sm:$0xff]  }
 0x121   :  { %1201 = vmatprep.subr.bf16.mxu0 %v2125_v6  ;;  %1283 = vmatprep.subr.bf16.mxu1 %v2128_v7  ;;  %v2177_v6 = vld [vmem:[%s2878_s5 + $0x2c0] ss:$16 sps:$4 sm:$0xff]   ;;  %v2180_v7 = vld [vmem:[%s2878_s5 + $0x2c8] ss:$16 sps:$4 sm:$0xff]  }
 0x124   :  { %1202 = vmatpush1.bf16.msra.mxu0 %v2123_v8  ;;  %1284 = vmatpush1.bf16.msra.mxu1 %v2126_v9  ;;  %v2185_v8 = vld [vmem:[%s2878_s5 + $0x2e4] ss:$16 sps:$4 sm:$0xff]   ;;  %v2188_v9 = vld [vmem:[%s2878_s5 + $0x2ec] ss:$16 sps:$4 sm:$0xff]  }
 0x125   :  { %1203 = vmatprep.subr.bf16.mxu0 %v2131_v10  ;;  %1285 = vmatprep.subr.bf16.mxu1 %v2134_v11  ;;  %v2183_v11 = vld [vmem:[%s2878_s5 + $0x2e0] ss:$16 sps:$4 sm:$0xff]  }
 0x128   :  { %1204 = vmatpush1.bf16.msra.mxu0 %v2129_v12  ;;  %1286 = vmatpush1.bf16.msra.mxu1 %v2132_v13  ;;  %v2186_v12 = vld [vmem:[%s2878_s5 + $0x2e8] ss:$16 sps:$4 sm:$0xff]   ;;  %v2189_v13 = vld [vmem:[%s2880_s7 + $0x40] sm:$0xff]  }
 0x129   :  { %1205 = vmatprep.subr.bf16.mxu0 %v2137_v14  ;;  %1287 = vmatprep.subr.bf16.mxu1 %v2140_v15  ;;  %v2190_v14 = vld [vmem:[%s2880_s7 + $0xc0] sm:$0xff]  }
 0x12c   :  { %1206 = vmatpush1.bf16.msra.mxu0 %v2135_v16  ;;  %1288 = vmatpush1.bf16.msra.mxu1 %v2138_v17  ;;  %v2191_v16 = vld [vmem:[%s2880_s7] sm:$0xff]  }
 0x12d   :  { %1216 = vmatprep.subr.bf16.mxu0 %v2143_v18  ;;  %1298 = vmatprep.subr.bf16.mxu1 %v2146_v19  ;;  %v2192_v17 = vld [vmem:[%s2880_s7 + $0x80] sm:$0xff]   ;;  %v2193_v19 = vld [vmem:[%s2880_s7 + $0x48] sm:$0xff]  }
 0x1c2   :  { %v518_v23 = vpop.f32.mrb[0].mxu1  ;;  %v1906_v24 = vpop.f32.mrb[4].mxu0 }
 0x1c3   :  { %v519_v25 = vadd.f32 %v518_v23, %v216_v21  ;;  %v520_v26 = vpop.f32.mrb[1].mxu1  ;;  %v1907_v27 = vpop.f32.mrb[5].mxu0  ;;  %v2195_v21 = vld [vmem:[%s2880_s7 + $0x8] sm:$0xff]   ;;  %v2197_v23 = vld [vmem:[%s2880_s7 + $0x50] sm:$0xff]  }
 0x1c4   :  { %v521_v28 = vadd.f32 %v520_v26, %v220_v22  ;;  %v2666_v29 = vadd.f32 %v1907_v27, %v1906_v24  ;;  %v522_v30 = vpop.f32.mrb[2].mxu1  ;;  %v1909_v31 = vpop.f32.mrb[6].mxu0  ;;  %v2196_v22 = vld [vmem:[%s2880_s7 + $0x88] sm:$0xff]   ;;  %v2198_v24 = vld [vmem:[%s2880_s7 + $0xd0] sm:$0xff]   ;;  %v2201_v27 = vld [vmem:[%s2880_s7 + $0x58] sm:$0xff]  }
 0x1c5   :  { %vm565_vm3 = vcmp.gt.f32.partialorder %v519_v25, 0.0  ;;  %v568_v32 = vmul.f32 0.2, %v519_v25  ;;  %v523_v33 = vpop.f32.mrb[3].mxu1  ;;  %v1910_v34 = vpop.f32.mrb[7].mxu0  ;;  %v2200_v26 = vld [vmem:[%s2880_s7 + $0x90] sm:$0xff]  }
 0x1c6   :  { %vm566_vm4 = vcmp.gt.f32.partialorder %v521_v28, 0.0  ;;  %v569_v35 = vmul.f32 0.2, %v521_v28  ;;  %v560_v5 = vadd.f32 %v2666_v29, %v224_v60  ;;  %v2203_v29 = vld [vmem:[%s2880_s7 + $0x18] sm:$0xff]   ;;  %v2205_v31 = vld [vmem:[%s2880_s7 + $0x60] sm:$0xff]  }
 0x1c7   :  { %v571_v36 = vsel %vm565_vm3, %v519_v25, %v568_v32  ;;  %v2199_v25 = vld [vmem:[%s2880_s7 + $0x10] sm:$0xff]   ;;  %v2204_v30 = vld [vmem:[%s2880_s7 + $0x98] sm:$0xff]   ;;  %v2206_v32 = vld [vmem:[%s2880_s7 + $0xe0] sm:$0xff]  }
 0x1c8   :  { %v572_v37 = vsel %vm566_vm4, %v521_v28, %v569_v35  ;;  %v574_v41 = vpack.c.bf16 %v571_v36, %v571_v36  ;;  %v570_v10 = vmul.f32 0.2, %v560_v5  ;;  %vm567_vm5 = vcmp.gt.f32.partialorder %v560_v5, 0.0  ;;  %v2202_v28 = vld [vmem:[%s2880_s7 + $0xd8] sm:$0xff]   ;;  %v2207_v33 = vld [vmem:[%s2880_s7 + $0x20] sm:$0xff]   ;;  %v2209_v35 = vld [vmem:[%s2880_s7 + $0x68] sm:$0xff]  }
 0x1c9   :  { %v575_v38 = vpack.c.bf16 %v572_v37, %v572_v37  ;;  %v2208_v34 = vld [vmem:[%s2880_s7 + $0xa0] sm:$0xff]   ;;  %v2210_v36 = vld [vmem:[%s2880_s7 + $0xe8] sm:$0xff]  }
 0x1ca   :  { %v573_v15 = vsel %vm567_vm5, %v560_v5, %v570_v10  ;;  %v2211_v37 = vld [vmem:[%s2880_s7 + $0x28] sm:$0xff]  }
 0x1cb   :  { %1207 = vmatprep.mubr.bf16.mxu0 %v575_v38  ;;  %1289 = vmatprep.mubr.bf16.mxu1 %v575_v38  ;;  %v576_v18 = vpack.c.bf16 %v573_v15, %v573_v15  ;;  %v2212_v38 = vld [vmem:[%s2880_s7 + $0xa8] sm:$0xff]   ;;  %v1857_v15 = vld [vmem:[%s2883_s8] ss:$0 sm:$0xff] }
 0x1cc   :  { %1208 = vmatmul.mubr.bf16.vlgmr.msra.gmra.mrb[8].mxu0 %v574_v41  ;;  %1290 = vmatmul.mubr.bf16.vlgmr.msra.gmra.mrb[4].mxu1 %v574_v41  ;;  %v2215_v41 = vld [vmem:[%s2880_s7 + $0x30] sm:$0xff]  }
 0x1cd   :  { %1217 = vmatpush1.bf16.msra.mxu0 %v2141_v39  ;;  %1299 = vmatpush1.bf16.msra.mxu1 %v2144_v40  ;;  %v2213_v39 = vld [vmem:[%s2880_s7 + $0x70] sm:$0xff]  }
 0x1ce   :  { %1218 = vmatprep.subr.bf16.mxu0 %v2149_v42  ;;  %1300 = vmatprep.subr.bf16.mxu1 %v2152_v43  ;;  %v2214_v40 = vld [vmem:[%s2880_s7 + $0xf0] sm:$0xff]   ;;  %v2217_v43 = vld [vmem:[%s2880_s7 + $0x78] sm:$0xff]  }
 0x1cf   :  { %1248 = vmatprep.mubr.bf16.mxu0 %v2223_v1  ;;  %1330 = vmatprep.mubr.bf16.mxu1 %v2223_v1  ;;  %v2164_v1 = vld [vmem:[%s2878_s5 + $0x26c] ss:$16 sps:$4 sm:$0xff]   ;;  %v2216_v42 = vld [vmem:[%s2880_s7 + $0xb0] sm:$0xff]  }
 0x1d1   :  { %1219 = vmatpush1.bf16.msra.mxu0 %v2147_v44  ;;  %1301 = vmatpush1.bf16.msra.mxu1 %v2150_v45  ;;  %v2218_v44 = vld [vmem:[%s2880_s7 + $0xf8] sm:$0xff]  }
 0x1d2   :  { %1220 = vmatprep.subr.bf16.mxu0 %v2155_v46  ;;  %1302 = vmatprep.subr.bf16.mxu1 %v2158_v47  ;;  %v2219_v45 = vld [vmem:[%s2880_s7 + $0x38] sm:$0xff]   ;;  %v673_v47 = vld [vmem:[%s2882_s6] sm:$0xf] }
 0x1d3   :  { %v2220_v46 = vld [vmem:[%s2880_s7 + $0xb8] sm:$0xff]  }
 0x1d5   :  { %1221 = vmatpush1.bf16.msra.mxu0 %v2153_v48  ;;  %1303 = vmatpush1.bf16.msra.mxu1 %v2156_v49  ;;  %v689_v48 = vsub.s32 3, %v2452_v61  ;;  %v678_v49 = vrot.slane %v673_v47, %v2455_v62 }
 0x1d6   :  { %1222 = vmatprep.subr.bf16.mxu0 %v2161_v50  ;;  %1304 = vmatprep.subr.bf16.mxu1 %v2164_v1  ;;  %v686_v50 = vrot.slane %v673_v47, %v223_v55  ;;  %v682_v1 = vrot.slane %v673_v47, %v2461_v0 }
 0x1d9   :  { %1223 = vmatpush1.bf16.msra.mxu0 %v2159_v51  ;;  %1305 = vmatpush1.bf16.msra.mxu1 %v2162_v52  ;;  %v690_v51 = vrot.slane %v673_v47, %v689_v48 }
 0x1da   :  { %1224 = vmatprep.subr.bf16.mxu0 %v2167_v53  ;;  %1306 = vmatprep.subr.bf16.mxu1 %v2170_v54 }
 0x1dd   :  { %1225 = vmatpush1.bf16.msra.mxu0 %v2165_v56  ;;  %1307 = vmatpush1.bf16.msra.mxu1 %v2168_v57 }
 0x1de   :  { %1226 = vmatprep.subr.bf16.mxu0 %v2173_v58  ;;  %1308 = vmatprep.subr.bf16.mxu1 %v2176_v59 }
 0x1e1   :  { %1227 = vmatpush1.bf16.msra.mxu0 %v2171_v63  ;;  %1309 = vmatpush1.bf16.msra.mxu1 %v2174_v2 }
 0x1e2   :  { %1228 = vmatprep.subr.bf16.mxu0 %v2179_v3  ;;  %1310 = vmatprep.subr.bf16.mxu1 %v2182_v4 }
 0x1e5   :  { %1229 = vmatpush1.bf16.msra.mxu0 %v2177_v6  ;;  %1311 = vmatpush1.bf16.msra.mxu1 %v2180_v7 }
 0x1e6   :  { %1230 = vmatprep.subr.bf16.mxu0 %v2185_v8  ;;  %1312 = vmatprep.subr.bf16.mxu1 %v2188_v9 }
 0x1e9   :  { %1231 = vmatpush1.bf16.msra.mxu0 %v2183_v11  ;;  %1313 = vmatpush1.bf16.msra.mxu1 %v2186_v12 }
 0x1ea   :  { %1912 = vmatprep.subr.bf16.mxu0 %v2189_v13  ;;  %1934 = vmatprep.subr.bf16.mxu1 %v2190_v14 }
 0x1ec   :  { %1249 = vmatmul.mubr.bf16.vlgmr.msra.gmra.mrb[8].mxu0 %v576_v18  ;;  %1331 = vmatmul.mubr.bf16.vlgmr.msra.gmra.mrb[4].mxu1 %v576_v18 }
 0x1ed   :  { %1913 = vmatpush3.bf16.msra.mxu0 %v2191_v16  ;;  %1935 = vmatpush3.bf16.msra.mxu1 %v2192_v17 }
 0x1ee   :  { %1914 = vmatprep.subr.bf16.mxu0 %v2193_v19  ;;  %1936 = vmatprep.subr.bf16.mxu1 %v2194_v20 }
 0x1f1   :  { %1915 = vmatpush3.bf16.msra.mxu0 %v2195_v21  ;;  %1937 = vmatpush3.bf16.msra.mxu1 %v2196_v22 }
 0x1f2   :  { %1916 = vmatprep.subr.bf16.mxu0 %v2197_v23  ;;  %1938 = vmatprep.subr.bf16.mxu1 %v2198_v24 }
 0x1f5   :  { %1917 = vmatpush3.bf16.msra.mxu0 %v2199_v25  ;;  %1939 = vmatpush3.bf16.msra.mxu1 %v2200_v26 }
 0x1f6   :  { %1918 = vmatprep.subr.bf16.mxu0 %v2201_v27  ;;  %1940 = vmatprep.subr.bf16.mxu1 %v2202_v28 }
 0x1f9   :  { %1919 = vmatpush3.bf16.msra.mxu0 %v2203_v29  ;;  %1941 = vmatpush3.bf16.msra.mxu1 %v2204_v30 }
 0x1fa   :  { %1920 = vmatprep.subr.bf16.mxu0 %v2205_v31  ;;  %1942 = vmatprep.subr.bf16.mxu1 %v2206_v32 }
 0x1fd   :  { %1921 = vmatpush3.bf16.msra.mxu0 %v2207_v33  ;;  %1943 = vmatpush3.bf16.msra.mxu1 %v2208_v34 }
 0x1fe   :  { %1922 = vmatprep.subr.bf16.mxu0 %v2209_v35  ;;  %1944 = vmatprep.subr.bf16.mxu1 %v2210_v36 }
 0x201   :  { %1923 = vmatpush3.bf16.msra.mxu0 %v2211_v37  ;;  %1945 = vmatpush3.bf16.msra.mxu1 %v2212_v38 }
 0x202   :  { %1924 = vmatprep.subr.bf16.mxu0 %v2213_v39  ;;  %1946 = vmatprep.subr.bf16.mxu1 %v2214_v40 }
 0x205   :  { %1925 = vmatpush3.bf16.msra.mxu0 %v2215_v41  ;;  %1947 = vmatpush3.bf16.msra.mxu1 %v2216_v42 }
 0x206   :  { %1926 = vmatprep.subr.bf16.mxu0 %v2217_v43  ;;  %1948 = vmatprep.subr.bf16.mxu1 %v2218_v44 }
 0x209   :  { %1927 = vmatpush3.bf16.msra.mxu0 %v2219_v45  ;;  %1949 = vmatpush3.bf16.msra.mxu1 %v2220_v46 }
 0x2bf   :  { %v1250_v52 = vpop.f32.mrb[8].mxu0  ;;  %v1332_v53 = vpop.f32.mrb[4].mxu1 }
 0x2c0   :  { %v1956_v54 = vadd.f32 %v1250_v52, %v678_v49  ;;  %v1958_v56 = vadd.f32 %v1332_v53, %v686_v50  ;;  %v1252_v57 = vpop.f32.mrb[9].mxu0  ;;  %v1334_v58 = vpop.f32.mrb[5].mxu1 }
 0x2c1   :  { %v1957_v59 = vadd.f32 %v1252_v57, %v682_v1  ;;  %v1959_v60 = vadd.f32 %v1334_v58, %v690_v51  ;;  %v1254_v63 = vpop.f32.mrb[10].mxu0  ;;  %v1336_v2 = vpop.f32.mrb[6].mxu1 }
 0x2c2   :  { %vm1339_vm6 = vcmp.gt.f32.partialorder %v1956_v54, 0.0  ;;  %v1343_v3 = vmul.f32 0.2, %v1956_v54  ;;  %vm1341_vm7 = vcmp.gt.f32.partialorder %v1958_v56, 0.0  ;;  %v1345_v62 = vmul.f32 0.2, %v1958_v56 }
 0x2c3   :  { %vm1340_vm8 = vcmp.gt.f32.partialorder %v1957_v59, 0.0  ;;  %v1344_v61 = vmul.f32 0.2, %v1957_v59  ;;  %vm1342_vm9 = vcmp.gt.f32.partialorder %v1959_v60, 0.0  ;;  %v1346_v55 = vmul.f32 0.2, %v1959_v60 }
 0x2c4   :  { %v1347_v0 = vsel %vm1339_vm6, %v1956_v54, %v1343_v3  ;;  %v1349_v4 = vsel %vm1341_vm7, %v1958_v56, %v1345_v62  ;;  %v1255_v5 = vpop.f32.mrb[11].mxu0  ;;  %v1337_v6 = vpop.f32.mrb[7].mxu1 }
 0x2c5   :  { %v1348_v7 = vsel %vm1340_vm8, %v1957_v59, %v1344_v61  ;;  %v1350_v8 = vsel %vm1342_vm9, %v1959_v60, %v1346_v55  ;;  %v1351_v11 = vpack.c.bf16 %v1347_v0, %v1347_v0  ;;  %v1353_v12 = vpack.c.bf16 %v1349_v4, %v1349_v4 }
 0x2c6   :  { %v1352_v9 = vpack.c.bf16 %v1348_v7, %v1348_v7  ;;  %v1354_v10 = vpack.c.bf16 %v1350_v8, %v1350_v8 }
 0x2c8   :  { %1650 = vmatprep.mubr.bf16.mxu0 %v1352_v9  ;;  %1690 = vmatprep.mubr.bf16.mxu1 %v1354_v10 }
 0x2c9   :  { %1651 = vmatmul.mubr.bf16.vlgmr.msra.gmra.mrb[12].mxu0 %v1351_v11  ;;  %1691 = vmatmul.mubr.bf16.vlgmr.msra.gmra.mrb[8].mxu1 %v1353_v12 }
 0x39c   :  { %v1928_v13 = vpop.f32.mrb[12].mxu0  ;;  %v1950_v14 = vpop.f32.mrb[8].mxu1 }
 0x39d   :  { %v1929_v16 = vpop.f32.mrb[13].mxu0  ;;  %v1951_v17 = vpop.f32.mrb[9].mxu1 }
 0x39e   :  { %v1930_v18 = vadd.f32 %v1929_v16, %v1928_v13  ;;  %v1952_v19 = vadd.f32 %v1951_v17, %v1950_v14  ;;  %v1931_v20 = vpop.f32.mrb[14].mxu0  ;;  %v1953_v21 = vpop.f32.mrb[10].mxu1 }
 0x39f   :  { %v1932_v22 = vpop.f32.mrb[15].mxu0  ;;  %v1954_v23 = vpop.f32.mrb[11].mxu1 }
 0x3a0   :  { %v1653_v24 = vadd.f32 %v1930_v18, %v1857_v15 }
 0x3a2   :  { %v1693_v25 = vadd.f32 %v1952_v19, %v1653_v24 }
 0x3a4   :  { %2221 = vtanh.f32 %v1693_v25 }
 0x3ae   :  { %v2222_v26 = vpop.eup %2221 }
 0x3af   :  { %1699 = vst [vmem:[%s2884_s9] sm:$0xff] %v2222_v26 }

</bundles_post_ra>
